<compile_context>
chip_gen: v6e
topology: v6e:2x2x1
jax: 0.10.0
libtpu: 0.0.40
codegen_flags: <defaults>
</compile_context>

<pallas_src>
import functools

import jax
import jax.numpy as jnp
from jax.experimental import pallas as pl
from jax.experimental.pallas import tpu as pltpu

_NEG_INF = -1e30  # bias padding -> exp() underflows to 0 in the softmax


def _heads_kernel(h_ref, w_ref, b_ref, ys_ref, yp_ref, yo_ref, *, d_pad):
    # h_ref: (TM, H) f32   w_ref: (H, 3*d_pad) bf16   b_ref: (1, 3*d_pad) f32
    h = jnp.maximum(h_ref[...], 0.0)             # ReLU in f32 (v5e-native VPU)
    hb = h.astype(jnp.bfloat16)                  # cast only at the MXU operand
    logits = jnp.dot(hb, w_ref[...], preferred_element_type=jnp.float32)
    logits = logits + b_ref[...]                 # (TM, 3*d_pad), f32

    def _softmax_head(col0, out_ref):
        lg = logits[:, col0:col0 + d_pad]        # tile-aligned static slice
        m = jnp.max(lg, axis=-1, keepdims=True)
        e = jnp.exp(lg - m)                      # padded lanes -> exactly 0
        denom = jnp.sum(e, axis=-1, keepdims=True)
        # Lane-dense full-width store (TM, d_pad); crop to D in the wrapper.
        out_ref[...] = (e * pl.reciprocal(denom, approx=True)).astype(out_ref.dtype)

    _softmax_head(0, ys_ref)
    _softmax_head(d_pad, yp_ref)
    _softmax_head(2 * d_pad, yo_ref)


def prepare_head_params(w_subj, b_subj, w_pred, b_pred, w_obj, b_obj):
    """One-time (parameter-load-time) padding/concat of the 3 head weights.

    Returns (w_cat bf16 (H, 3*d_pad), b_cat f32 (1, 3*d_pad), D, d_pad).
    """
    D = w_subj.shape[1]
    d_pad = pl.cdiv(D, 128) * 128                # 161 -> 256, lane-aligned

    def _pad(w, b):
        wp = jnp.pad(w.astype(jnp.bfloat16), ((0, 0), (0, d_pad - D)))
        bp = jnp.pad(b.astype(jnp.float32), (0, d_pad - D),
                     constant_values=_NEG_INF)
        return wp, bp

    ws, bs = _pad(w_subj, b_subj)
    wp, bp = _pad(w_pred, b_pred)
    wo, bo = _pad(w_obj, b_obj)
    w_cat = jnp.concatenate([ws, wp, wo], axis=1)                 # (H, 3*d_pad)
    b_cat = jnp.concatenate([bs, bp, bo]).reshape(1, 3 * d_pad)   # (1, 3*d_pad)
    return w_cat, b_cat, D, d_pad


def argument_extraction_heads(h, w_cat, b_cat, D, d_pad, *, tm=512):
    """h: (B, S, H) float32. Returns (y_subj, y_pred, y_obj), each (B, D, S)."""
    B, S, H = h.shape
    M = B * S
    h2 = h.reshape(M, H)                         # f32, no wrapper cast/pad

    # Row-tile size: multiple of 8, clamped for tiny inputs.  tm=512 keeps the
    # per-step VMEM footprint small enough for v7x (64 MiB) / v5e (16 MiB
    # default scoped) at realistic ALBERT shapes while still amortizing the
    # ~0.35 us per-step overhead.
    tm_eff = min(tm, pl.cdiv(M, 8) * 8)
    n_tiles = pl.cdiv(M, tm_eff)

    out_shape = jax.ShapeDtypeStruct((M, d_pad), jnp.float32)
    kernel = functools.partial(_heads_kernel, d_pad=d_pad)

    ys, yp_, yo = pl.pallas_call(
        kernel,
        out_shape=(out_shape, out_shape, out_shape),
        grid_spec=pltpu.PrefetchScalarGridSpec(
            num_scalar_prefetch=0,
            grid=(n_tiles,),
            in_specs=[
                pl.BlockSpec((tm_eff, H), lambda i: (i, 0)),        # h tile
                pl.BlockSpec((H, 3 * d_pad), lambda i: (0, 0)),     # resident W
                pl.BlockSpec((1, 3 * d_pad), lambda i: (0, 0)),     # resident b
            ],
            out_specs=[pl.BlockSpec((tm_eff, d_pad), lambda i: (i, 0))] * 3,
        ),
        compiler_params=pltpu.CompilerParams(
            dimension_semantics=("parallel",)),   # megacore shard on v7x
    )(h2, w_cat, b_cat)

    def _finish(y):
        # Lane crop (pad lanes are exact zeros) + PyTorch (B, D, S) permute.
        return jnp.transpose(y[:, :D].reshape(B, S, D), (0, 2, 1))

    return _finish(ys), _finish(yp_), _finish(yo)


def synthetic_encoder(input_ids, speaker_ids, tok_emb, type_emb):
    """Deterministic stand-in for the ALBERT backbone's last_hidden_state."""
    # TODO(synk): replace with a real transformer encoder if ever needed.
    return tok_emb[input_ids] + type_emb[speaker_ids]


def _reference_heads(h, w_subj, b_subj, w_pred, b_pred, w_obj, b_obj):
    """Pure-JAX f32 reference of the PyTorch forward (post-backbone)."""
    hr = jnp.maximum(h, 0.0)

    def head(w, b):
        return jax.nn.softmax(hr @ w + b, axis=-1).transpose(0, 2, 1)

    return head(w_subj, b_subj), head(w_pred, b_pred), head(w_obj, b_obj)


if __name__ == "__main__":
    key = jax.random.PRNGKey(0)
    k1, k2, k3, k4, k5, k6, k7, k8, k9, k10 = jax.random.split(key, 10)

    # Small shapes consistent with the module's forward
    B, S = 2, 8          # batch, sequence length
    H = 32               # hidden size (stand-in for ALBERT hidden_size)
    D = 161              # output_dim (BIO label space)
    VOCAB, N_TYPES = 50, 2

    # Deterministic parameter init
    tok_emb = jax.random.normal(k1, (VOCAB, H), jnp.float32) * 0.02
    type_emb = jax.random.normal(k2, (N_TYPES, H), jnp.float32) * 0.02
    w_subj = jax.random.normal(k3, (H, D), jnp.float32) * 0.05
    b_subj = jax.random.normal(k4, (D,), jnp.float32) * 0.01
    w_pred = jax.random.normal(k5, (H, D), jnp.float32) * 0.05
    b_pred = jax.random.normal(k6, (D,), jnp.float32) * 0.01
    w_obj = jax.random.normal(k7, (H, D), jnp.float32) * 0.05
    b_obj = jax.random.normal(k8, (D,), jnp.float32) * 0.01

    # Deterministic example inputs (LongTensor equivalents)
    input_ids = jax.random.randint(k9, (B, S), 0, VOCAB, dtype=jnp.int32)
    speaker_ids = jax.random.randint(k10, (B, S), 0, N_TYPES, dtype=jnp.int32)

    # Backbone stand-in (plain JAX glue)
    last_hidden_state = synthetic_encoder(input_ids, speaker_ids, tok_emb, type_emb)

    # One-time parameter prep (hoisted out of the per-call path)
    w_cat, b_cat, D_out, d_pad = prepare_head_params(
        w_subj, b_subj, w_pred, b_pred, w_obj, b_obj)
    w_cat, b_cat = jax.block_until_ready((w_cat, b_cat))

    # Pallas hot path: relu -> fused 3-head linear + softmax, then permute
    y_subj, y_pred, y_obj = argument_extraction_heads(
        last_hidden_state, w_cat, b_cat, D_out, d_pad)
    jax.block_until_ready((y_subj, y_pred, y_obj))

    # Sanity: output layout (B, D, S)
    assert y_subj.shape == (B, D, S)
    assert y_pred.shape == (B, D, S)
    assert y_obj.shape == (B, D, S)

    # Softmax sums to ~1 over the label axis (approx reciprocal => loose tol)
    for y in (y_subj, y_pred, y_obj):
        sums = jnp.sum(y, axis=1)
        assert bool(jnp.allclose(sums, 1.0, atol=5e-3)), "softmax sums off"

    # Numerical check against a pure-JAX f32 reference (bf16 matmul => loose tol)
    r_subj, r_pred, r_obj = _reference_heads(
        last_hidden_state, w_subj, b_subj, w_pred, b_pred, w_obj, b_obj)
    assert bool(jnp.allclose(y_subj, r_subj, atol=2e-3))
    assert bool(jnp.allclose(y_pred, r_pred, atol=2e-3))
    assert bool(jnp.allclose(y_obj, r_obj, atol=2e-3))

    print("KERNEL_OK")
</pallas_src>

<mosaic_0001>
module attributes {stable_mosaic.version = 11 : i64} {
  func.func @_heads_kernel(%arg0: i32, %arg1: memref<16x32xf32, #tpu.memory_space<vmem>>, %arg2: memref<32x768xbf16, #tpu.memory_space<vmem>>, %arg3: memref<1x768xf32, #tpu.memory_space<vmem>>, %arg4: memref<16x256xf32, #tpu.memory_space<vmem>>, %arg5: memref<16x256xf32, #tpu.memory_space<vmem>>, %arg6: memref<16x256xf32, #tpu.memory_space<vmem>>) attributes {dimension_semantics = [#tpu.dimension_semantics<parallel>], iteration_bounds = array<i64: 1>, scalar_prefetch = 0 : i64, scratch_operands = 0 : i64, tpu.core_type = #tpu.core_type<tc>, window_params = [{transform_indices = @transform_0, window_bounds = array<i64: 16, 32>}, {pipeline_mode = #tpu.pipeline_mode<synchronous>, transform_indices = @transform_1, window_bounds = array<i64: 32, 768>}, {pipeline_mode = #tpu.pipeline_mode<synchronous>, transform_indices = @transform_2, window_bounds = array<i64: 1, 768>}, {transform_indices = @transform_3, window_bounds = array<i64: 16, 256>}, {transform_indices = @transform_4, window_bounds = array<i64: 16, 256>}, {transform_indices = @transform_5, window_bounds = array<i64: 16, 256>}]} {
    %c0 = arith.constant 0 : index
    %c0_0 = arith.constant 0 : index
    %0 = vector.load %arg1[%c0, %c0_0] : memref<16x32xf32, #tpu.memory_space<vmem>>, vector<16x32xf32>
    %cst = arith.constant 0.000000e+00 : f32
    %1 = vector.broadcast %cst : f32 to vector<16x32xf32>
    %2 = arith.maximumf %0, %1 : vector<16x32xf32>
    %3 = arith.truncf %2 : vector<16x32xf32> to vector<16x32xbf16>
    %c0_1 = arith.constant 0 : index
    %c0_2 = arith.constant 0 : index
    %4 = vector.load %arg2[%c0_1, %c0_2] : memref<32x768xbf16, #tpu.memory_space<vmem>>, vector<32x768xbf16>
    %cst_3 = arith.constant dense<0.000000e+00> : vector<16x768xf32>
    %5 = tpu.matmul %3, %4, %cst_3 {dimension_numbers = #tpu.dot_dimension_numbers<[1], [0], [0], [1], [0, 0, 1, 1], [], []>} : vector<16x32xbf16>, vector<32x768xbf16>, vector<16x768xf32> -> vector<16x768xf32>
    %c0_4 = arith.constant 0 : index
    %c0_5 = arith.constant 0 : index
    %6 = vector.load %arg3[%c0_4, %c0_5] : memref<1x768xf32, #tpu.memory_space<vmem>>, vector<1x768xf32>
    %7 = vector.broadcast %6 : vector<1x768xf32> to vector<16x768xf32>
    %8 = arith.addf %5, %7 : vector<16x768xf32>
    %9 = vector.extract_strided_slice %8 {offsets = [0, 0], sizes = [16, 256], strides = [1, 1]} : vector<16x768xf32> to vector<16x256xf32>
    %cst_6 = arith.constant dense<0xFF800000> : vector<16xf32>
    %10 = vector.multi_reduction <maximumf>, %9, %cst_6 [1] : vector<16x256xf32> to vector<16xf32>
    %11 = vector.shape_cast %10 : vector<16xf32> to vector<16x1xf32>
    %12 = vector.broadcast %11 : vector<16x1xf32> to vector<16x256xf32>
    %13 = arith.subf %9, %12 : vector<16x256xf32>
    %14 = math.exp %13 : vector<16x256xf32>
    %cst_7 = arith.constant dense<0.000000e+00> : vector<16xf32>
    %15 = vector.multi_reduction <add>, %14, %cst_7 [1] : vector<16x256xf32> to vector<16xf32>
    %16 = vector.shape_cast %15 : vector<16xf32> to vector<16x1xf32>
    %17 = tpu.reciprocal %16 {approx = true} : vector<16x1xf32> -> vector<16x1xf32>
    %18 = vector.broadcast %17 : vector<16x1xf32> to vector<16x256xf32>
    %19 = arith.mulf %14, %18 : vector<16x256xf32>
    %c0_8 = arith.constant 0 : index
    %c0_9 = arith.constant 0 : index
    %20 = vector.load %arg4[%c0_8, %c0_9] : memref<16x256xf32, #tpu.memory_space<vmem>>, vector<16x256xf32>
    tpu.vector_store %arg4[%c0_8, %c0_9], %19 {strides = array<i32>} : memref<16x256xf32, #tpu.memory_space<vmem>>, vector<16x256xf32>,
    %21 = vector.extract_strided_slice %8 {offsets = [0, 256], sizes = [16, 256], strides = [1, 1]} : vector<16x768xf32> to vector<16x256xf32>
    %cst_10 = arith.constant dense<0xFF800000> : vector<16xf32>
    %22 = vector.multi_reduction <maximumf>, %21, %cst_10 [1] : vector<16x256xf32> to vector<16xf32>
    %23 = vector.shape_cast %22 : vector<16xf32> to vector<16x1xf32>
    %24 = vector.broadcast %23 : vector<16x1xf32> to vector<16x256xf32>
    %25 = arith.subf %21, %24 : vector<16x256xf32>
    %26 = math.exp %25 : vector<16x256xf32>
    %cst_11 = arith.constant dense<0.000000e+00> : vector<16xf32>
    %27 = vector.multi_reduction <add>, %26, %cst_11 [1] : vector<16x256xf32> to vector<16xf32>
    %28 = vector.shape_cast %27 : vector<16xf32> to vector<16x1xf32>
    %29 = tpu.reciprocal %28 {approx = true} : vector<16x1xf32> -> vector<16x1xf32>
    %30 = vector.broadcast %29 : vector<16x1xf32> to vector<16x256xf32>
    %31 = arith.mulf %26, %30 : vector<16x256xf32>
    %c0_12 = arith.constant 0 : index
    %c0_13 = arith.constant 0 : index
    %32 = vector.load %arg5[%c0_12, %c0_13] : memref<16x256xf32, #tpu.memory_space<vmem>>, vector<16x256xf32>
    tpu.vector_store %arg5[%c0_12, %c0_13], %31 {strides = array<i32>} : memref<16x256xf32, #tpu.memory_space<vmem>>, vector<16x256xf32>,
    %33 = vector.extract_strided_slice %8 {offsets = [0, 512], sizes = [16, 256], strides = [1, 1]} : vector<16x768xf32> to vector<16x256xf32>
    %cst_14 = arith.constant dense<0xFF800000> : vector<16xf32>
    %34 = vector.multi_reduction <maximumf>, %33, %cst_14 [1] : vector<16x256xf32> to vector<16xf32>
    %35 = vector.shape_cast %34 : vector<16xf32> to vector<16x1xf32>
    %36 = vector.broadcast %35 : vector<16x1xf32> to vector<16x256xf32>
    %37 = arith.subf %33, %36 : vector<16x256xf32>
    %38 = math.exp %37 : vector<16x256xf32>
    %cst_15 = arith.constant dense<0.000000e+00> : vector<16xf32>
    %39 = vector.multi_reduction <add>, %38, %cst_15 [1] : vector<16x256xf32> to vector<16xf32>
    %40 = vector.shape_cast %39 : vector<16xf32> to vector<16x1xf32>
    %41 = tpu.reciprocal %40 {approx = true} : vector<16x1xf32> -> vector<16x1xf32>
    %42 = vector.broadcast %41 : vector<16x1xf32> to vector<16x256xf32>
    %43 = arith.mulf %38, %42 : vector<16x256xf32>
    %c0_16 = arith.constant 0 : index
    %c0_17 = arith.constant 0 : index
    %44 = vector.load %arg6[%c0_16, %c0_17] : memref<16x256xf32, #tpu.memory_space<vmem>>, vector<16x256xf32>
    tpu.vector_store %arg6[%c0_16, %c0_17], %43 {strides = array<i32>} : memref<16x256xf32, #tpu.memory_space<vmem>>, vector<16x256xf32>,
    return
  }
  func.func @transform_0(%arg0: i32) -> (i32, i32) {
    %c0_i32 = arith.constant 0 : i32
    %c0_i32_0 = arith.constant 0 : i32
    return %arg0, %c0_i32 : i32, i32
  }
  func.func @transform_1(%arg0: i32) -> (i32, i32) {
    %c0_i32 = arith.constant 0 : i32
    %c0_i32_0 = arith.constant 0 : i32
    %c0_i32_1 = arith.constant 0 : i32
    return %c0_i32, %c0_i32_0 : i32, i32
  }
  func.func @transform_2(%arg0: i32) -> (i32, i32) {
    %c0_i32 = arith.constant 0 : i32
    %c0_i32_0 = arith.constant 0 : i32
    %c0_i32_1 = arith.constant 0 : i32
    return %c0_i32, %c0_i32_0 : i32, i32
  }
  func.func @transform_3(%arg0: i32) -> (i32, i32) {
    %c0_i32 = arith.constant 0 : i32
    %c0_i32_0 = arith.constant 0 : i32
    return %arg0, %c0_i32 : i32, i32
  }
  func.func @transform_4(%arg0: i32) -> (i32, i32) {
    %c0_i32 = arith.constant 0 : i32
    %c0_i32_0 = arith.constant 0 : i32
    return %arg0, %c0_i32 : i32, i32
  }
  func.func @transform_5(%arg0: i32) -> (i32, i32) {
    %c0_i32 = arith.constant 0 : i32
    %c0_i32_0 = arith.constant 0 : i32
    return %arg0, %c0_i32 : i32, i32
  }
}

</mosaic_0001>

<bundles_post_ra>
// kernel: tpu_custom_call.1
= control target key start
LH: loop header
LB: loop body
LE: loop exit
PB: predicated region body
PF: predicated region fallthrough
CT: control target
= control target key end

     0   :  { %11 = vsyncpa [#allocation3], 0  ;;  %s740_s0 = inlined_call_operand.hbm [shape: f32[16,32], index: 0, kind: input, shape index: {}]   ;;  %s741_s1 = inlined_call_operand.hbm [shape: bf16[32,768], index: 1, kind: input, shape index: {}]   ;;  %s742_s2 = inlined_call_operand.hbm [shape: f32[1,768], index: 2, kind: input, shape index: {}]   ;;  %s743_s3 = inlined_call_operand.hbm [shape: f32[16,256], index: 3, kind: output, shape index: {0}]   ;;  %s744_s4 = inlined_call_operand.hbm [shape: f32[16,256], index: 4, kind: output, shape index: {1}]   ;;  %s745_s5 = inlined_call_operand.hbm [shape: f32[16,256], index: 5, kind: output, shape index: {2}]  }
   0x1   :  { %12 = vsyncpa [#allocation6], 0 }
   0x2   :  { %13 = vsyncpa [#allocation4], 0 }
   0x3   :  { %14 = vsyncpa [#allocation10], 0  ;;  %s662_s18 = smov [#allocation5]  }
   0x4   :  { %s32_s19 = sshll.u32 %s662_s18, 4  ;;  %s33_s19 = int_to_ptr.vmem [resolvable:$true] %s32_s19 }
   0x5   :  { %s542_s20 = scalar_lea.vmem %s33_s19, 1536  ;;  %p547_p1 = scmp.lt.s32.totalorder %s33_s19, %s33_s19 }
   0x6   :  { %p543_p0 = scmp.ne.s32.totalorder %s33_s19, %s542_s20  ;;  %p548_p2 = scmp.lt.s32.totalorder %s542_s20, %s542_s20 }
   0x8   :  { %p549_p3 = por %p548_p2, %p547_p1 }
   0xa   :  { %p550_p4 = pnand %p549_p3, %p543_p0 }
   0xc   :  { %553 = shalt.err (!%p550_p4)
}
   0xd   :  { %s663_s21 = smov 384   ;;  %s664_s22 = smov 24  }
   0xe   :  { %38 = dma.hbm_to_vmem [thread:$0]  %s741_s1, 1536, %s33_s19, [#allocation6], %s663_s21, %s663_s21, %s664_s22  }
   0xf   :  { %s665_s25 = smov [#allocation2]  }
  0x10   :  { %s20_s26 = sshll.u32 %s665_s25, 4  ;;  %s21_s26 = int_to_ptr.vmem [resolvable:$true] %s20_s26 }
  0x11   :  { %s562_s27 = scalar_lea.vmem %s21_s26, 256  ;;  %p567_p6 = scmp.lt.s32.totalorder %s21_s26, %s21_s26 }
  0x12   :  { %p563_p5 = scmp.ne.s32.totalorder %s21_s26, %s562_s27  ;;  %p568_p7 = scmp.lt.s32.totalorder %s562_s27, %s562_s27 }
  0x14   :  { %p569_p8 = por %p568_p7, %p567_p6 }
  0x16   :  { %p570_p9 = pnand %p569_p8, %p563_p5 }
  0x18   :  { %573 = shalt.err (!%p570_p9)
}
  0x19   :  { %s666_s28 = smov 128   ;;  %s667_s29 = smov 8  }
  0x1a   :  { %26 = dma.hbm_to_vmem [thread:$0]  %s740_s0, 256, %s21_s26, [#allocation3], %s666_s28, %s666_s28, %s667_s29  }
  0x1b   :  { %s668_s7 = smov [#allocation7]  }
  0x1c   :  { %s45_s8 = sshll.u32 %s668_s7, 4  ;;  %s46_s8 = int_to_ptr.vmem [resolvable:$true] %s45_s8 }
  0x1d   :  { %s582_s1 = scalar_lea.vmem %s46_s8, 96  ;;  %p587_p11 = scmp.lt.s32.totalorder %s46_s8, %s46_s8 }
  0x1e   :  { %p583_p10 = scmp.ne.s32.totalorder %s46_s8, %s582_s1  ;;  %p588_p12 = scmp.lt.s32.totalorder %s582_s1, %s582_s1 }
  0x20   :  { %p589_p13 = por %p588_p12, %p587_p11 }
  0x22   :  { %p590_p0 = pnand %p589_p13, %p583_p10 }
  0x24   :  { %593 = shalt.err (!%p590_p0)
}
  0x25   :  { %48 = dma.hbm_to_vmem [thread:$0]  %s742_s2, 96, %s46_s8, [#allocation6]  }
  0x26   :  { %654 = dma.done.wait [#allocation3], 256  }
  0x27   :  { %655 = vsyncadd [#allocation3], 4294967040 }
  0x28   :  { %656 = dma.done.wait [#allocation6], 1632  }
  0x29   :  { %657 = vsyncadd [#allocation6], 4294965664  ;;  %v669_v0 = vmov 0   ;;  %v480_v1 = vld [vmem:[#allocation5 + $0x34] ss:$24 sps:$4 sm:$0xff]   ;;  %v60_v10 = vld [vmem:[#allocation2 + $0x8] sm:$0xff]  ;;  %v78_v18 = vlaneseq }
  0x2a   :  { %204 = vmatprep.mubr.bf16.mxu0 %v669_v0  ;;  %247 = vmatprep.mubr.bf16.mxu1 %v669_v0  ;;  %v482_v2 = vld [vmem:[#allocation5 + $0x3c] ss:$24 sps:$4 sm:$0xff]   ;;  %v484_v3 = vld [vmem:[#allocation5 + $0x30] ss:$24 sps:$4 sm:$0xff]   ;;  %v488_v6 = vld [vmem:[#allocation5 + $0xc] ss:$24 sps:$4 sm:$0xff]  }
  0x2b   :  { %184 = vmatprep.subr.bf16.mxu0 %v480_v1  ;;  %v485_v4 = vld [vmem:[#allocation5 + $0x38] ss:$24 sps:$4 sm:$0xff]   ;;  %227 = vmatprep.subr.bf16.mxu1 %v482_v2  ;;  %v486_v5 = vld [vmem:[#allocation5 + $0x4] ss:$24 sps:$4 sm:$0xff]   ;;  %v491_v8 = vld [vmem:[#allocation5 + $0x8] ss:$24 sps:$4 sm:$0xff]  }
  0x2c   :  { %185 = vmatpush1.bf16.msra.mxu0 %v484_v3  ;;  %228 = vmatpush1.bf16.msra.mxu1 %v485_v4  ;;  %v490_v7 = vld [vmem:[#allocation5] ss:$24 sps:$4 sm:$0xff]   ;;  %v59_v9 = vld [vmem:[#allocation2] sm:$0xff]  ;;  %v62_v12 = vmax.f32 %v60_v10, 0.0  ;;  %v494_v13 = vld [vmem:[#allocation5 + $0x44] ss:$24 sps:$4 sm:$0xff]  }
  0x2d   :  { %186 = vmatprep.subr.bf16.mxu0 %v486_v5  ;;  %229 = vmatprep.subr.bf16.mxu1 %v488_v6  ;;  %v61_v11 = vmax.f32 %v59_v9, 0.0  ;;  %vm168_vm0 = vcmask 261120   ;;  %v492_v15 = vld [vmem:[#allocation5 + $0x40] ss:$24 sps:$4 sm:$0xff]   ;;  %v497_v16 = vld [vmem:[#allocation5 + $0x14] ss:$24 sps:$4 sm:$0xff]  }
  0x2e   :  { %v495_v17 = vld [vmem:[#allocation5 + $0x10] ss:$24 sps:$4 sm:$0xff]   ;;  %v79_v19 = vshrl.u32 %v78_v18, 7  ;;  %v76_v24 = vld [vmem:[#allocation7] sm:$0x3f]  ;;  %s670_s0 = smov [#allocation9]  }
  0x2f   :  { %v63_v14 = vpack.c.bf16 %v62_v12, %v61_v11  ;;  %s420_s2 = sshll.u32 %s670_s0, 4  ;;  %s671_s11 = smov [#allocation8]   ;;  %s421_s2 = int_to_ptr.vmem [resolvable:$true] %s420_s2 }
  0x30   :  { %187 = vmatpush1.bf16.msra.mxu0 %v490_v7  ;;  %230 = vmatpush1.bf16.msra.mxu1 %v491_v8  ;;  %v80_v20 = vsub.s32 0, %v79_v19  ;;  %v88_v21 = vsub.s32 2, %v79_v19  ;;  %v84_v22 = vsub.s32 1, %v79_v19  ;;  %v92_v23 = vsub.s32 3, %v79_v19  ;;  %s408_s12 = sshll.u32 %s671_s11, 4  ;;  %s672_s13 = smov [#allocation11]   ;;  %s409_s12 = int_to_ptr.vmem [resolvable:$true] %s408_s12 }
  0x31   :  { %270 = vmatprep.subr.bf16.mxu0 %v494_v13  ;;  %v96_v33 = vsub.s32 4, %v79_v19  ;;  %v100_v34 = vsub.s32 5, %v79_v19  ;;  %s432_s14 = sshll.u32 %s672_s13, 4  ;;  %s594_s15 = scalar_lea.vmem %s421_s2, 512  ;;  %s433_s14 = int_to_ptr.vmem [resolvable:$true] %s432_s14 }
  0x32   :  { %v81_v25 = vrot.slane %v76_v24, %v80_v20  ;;  %v89_v26 = vrot.slane %v76_v24, %v88_v21  ;;  %v85_v27 = vrot.slane %v76_v24, %v84_v22  ;;  %v93_v28 = vrot.slane %v76_v24, %v92_v23  ;;  %p595_p1 = scmp.ne.s32.totalorder %s421_s2, %s594_s15  ;;  %p599_p2 = scmp.lt.s32.totalorder %s421_s2, %s421_s2 }
  0x33   :  { %464 = vmatmul.mubr.msk.bf16.vlgmr.msra.gmra.mxu0 %vm168_vm0, %v63_v14  ;;  %465 = vmatmul.mubr.msk.bf16.vlgmr.msra.gmra.mxu1 %vm168_vm0, %v63_v14  ;;  %v97_v46 = vrot.slane %v76_v24, %v96_v33  ;;  %v101_v47 = vrot.slane %v76_v24, %v100_v34  ;;  %p600_p3 = scmp.lt.s32.totalorder %s594_s15, %s594_s15 }
  0x34   :  { %271 = vmatpush1.bf16.msra.mxu0 %v492_v15  ;;  %290 = vmatprep.mubr.bf16.mxu0 %v669_v0 }
  0x35   :  { %272 = vmatprep.subr.bf16.mxu0 %v497_v16  ;;  %p601_p4 = por %p600_p3, %p599_p2 }
  0x37   :  { %p602_p5 = pnand %p601_p4, %p595_p1 }
  0x38   :  { %273 = vmatpush1.bf16.msra.mxu0 %v495_v17 }
  0x3b   :  { %466 = vmatmul.mubr.msk.bf16.vlgmr.msra.gmra.mxu0 %vm168_vm0, %v63_v14 }
  0xf3   :  { %v206_v29 = vpop.f32.mrf.mxu0  ;;  %v249_v30 = vpop.f32.mrf.mxu1 }
  0xf4   :  { %v207_v35 = vadd.f32 %v206_v29, %v81_v25  ;;  %v250_v36 = vadd.f32 %v249_v30, %v89_v26 }
  0xf5   :  { %v208_v31 = vpop.f32.mrf.mxu0  ;;  %v251_v32 = vpop.f32.mrf.mxu1 }
  0xf6   :  { %v209_v37 = vadd.f32 %v208_v31, %v85_v27  ;;  %v252_v38 = vadd.f32 %v251_v32, %v93_v28 }
  0xf7   :  { %v210_v39 = vpop.f32.mrf.mxu0  ;;  %v253_v40 = vpop.f32.mrf.mxu1 }
  0xf8   :  { %v335_v41 = vmax.f32 %v250_v36, %v252_v38  ;;  %v301_v42 = vmax.f32 %v207_v35, %v209_v37  ;;  %v211_v43 = vadd.f32 %v210_v39, %v81_v25  ;;  %v254_v48 = vadd.f32 %v253_v40, %v89_v26 }
  0xf9   :  { %v212_v44 = vpop.f32.mrf.mxu0  ;;  %v255_v45 = vpop.f32.mrf.mxu1 }
  0xfa   :  { %v213_v49 = vadd.f32 %v212_v44, %v85_v27  ;;  %v256_v50 = vadd.f32 %v255_v45, %v93_v28  ;;  %336 = vmax.xlane.f32.xlu0 %v335_v41  ;;  %302 = vmax.xlane.f32.xlu1 %v301_v42 }
  0xfb   :  { %v292_v51 = vpop.f32.mrf.mxu0 }
  0xfc   :  { %v338_v52 = vmax.f32 %v254_v48, %v256_v50  ;;  %v304_v53 = vmax.f32 %v211_v43, %v213_v49  ;;  %v293_v55 = vadd.f32 %v292_v51, %v97_v46 }
  0xfd   :  { %v294_v54 = vpop.f32.mrf.mxu0 }
  0xfe   :  { %v295_v56 = vadd.f32 %v294_v54, %v101_v47  ;;  %339 = vmax.xlane.f32.xlu0 %v338_v52  ;;  %305 = vmax.xlane.f32.xlu1 %v304_v53 }
  0xff   :  { %v296_v57 = vpop.f32.mrf.mxu0 }
 0x100   :  { %v369_v58 = vmax.f32 %v293_v55, %v295_v56  ;;  %v297_v60 = vadd.f32 %v296_v57, %v97_v46 }
 0x101   :  { %v298_v59 = vpop.f32.mrf.mxu0 }
 0x102   :  { %v299_v61 = vadd.f32 %v298_v59, %v101_v47  ;;  %370 = vmax.xlane.f32.xlu0 %v369_v58 }
 0x104   :  { %v372_v62 = vmax.f32 %v297_v60, %v299_v61 }
 0x106   :  { %373 = vmax.xlane.f32.xlu1 %v372_v62 }
 0x183   :  { %v337_v63 = vpop.xlane.xlu0 %336  ;;  %v303_v0 = vpop.xlane.xlu1 %302 }
 0x184   :  { %v341_v1 = vsub.f32 %v250_v36, %v337_v63  ;;  %v342_v2 = vsub.f32 %v252_v38, %v337_v63  ;;  %v307_v3 = vsub.f32 %v207_v35, %v303_v0  ;;  %v308_v4 = vsub.f32 %v209_v37, %v303_v0 }
 0x186   :  { %v345_v5 = vmul.f32 1.442695, %v341_v1  ;;  %v347_v6 = vmul.f32 1.442695, %v342_v2  ;;  %v311_v7 = vmul.f32 1.442695, %v307_v3 }
 0x187   :  { %v313_v8 = vmul.f32 1.442695, %v308_v4  ;;  %v340_v9 = vpop.xlane.xlu0 %339  ;;  %v306_v10 = vpop.xlane.xlu1 %305 }
 0x188   :  { %498 = vpow2.f32 %v345_v5  ;;  %v343_v11 = vsub.f32 %v254_v48, %v340_v9  ;;  %v344_v12 = vsub.f32 %v256_v50, %v340_v9  ;;  %v309_v13 = vsub.f32 %v211_v43, %v306_v10 }
 0x189   :  { %500 = vpow2.f32 %v347_v6  ;;  %v310_v14 = vsub.f32 %v213_v49, %v306_v10 }
 0x18a   :  { %502 = vpow2.f32 %v311_v7  ;;  %v349_v15 = vmul.f32 1.442695, %v343_v11  ;;  %v351_v16 = vmul.f32 1.442695, %v344_v12  ;;  %v315_v17 = vmul.f32 1.442695, %v309_v13 }
 0x18b   :  { %504 = vpow2.f32 %v313_v8  ;;  %v317_v18 = vmul.f32 1.442695, %v310_v14  ;;  %v371_v19 = vpop.xlane.xlu0 %370 }
 0x18c   :  { %506 = vpow2.f32 %v349_v15  ;;  %v375_v20 = vsub.f32 %v293_v55, %v371_v19  ;;  %v376_v21 = vsub.f32 %v295_v56, %v371_v19 }
 0x18d   :  { %508 = vpow2.f32 %v351_v16 }
 0x18e   :  { %510 = vpow2.f32 %v315_v17  ;;  %v379_v22 = vmul.f32 1.442695, %v375_v20  ;;  %v381_v23 = vmul.f32 1.442695, %v376_v21 }
 0x18f   :  { %512 = vpow2.f32 %v317_v18  ;;  %v374_v24 = vpop.xlane.xlu1 %373 }
 0x190   :  { %514 = vpow2.f32 %v379_v22  ;;  %v377_v25 = vsub.f32 %v297_v60, %v374_v24  ;;  %v378_v26 = vsub.f32 %v299_v61, %v374_v24 }
 0x191   :  { %516 = vpow2.f32 %v381_v23 }
 0x192   :  { %v383_v27 = vmul.f32 1.442695, %v377_v25  ;;  %v385_v28 = vmul.f32 1.442695, %v378_v26 }
 0x194   :  { %518 = vpow2.f32 %v383_v27 }
 0x195   :  { %v499_v29 = vpop.eup %498  ;;  %520 = vpow2.f32 %v385_v28 }
 0x196   :  { %v501_v30 = vpop.eup %500 }
 0x197   :  { %v503_v31 = vpop.eup %502  ;;  %v353_v32 = vadd.f32 %v501_v30, %v499_v29 }
 0x198   :  { %v505_v33 = vpop.eup %504 }
 0x199   :  { %v507_v34 = vpop.eup %506  ;;  %354 = vadd.xlane.f32.xlu0 %v353_v32  ;;  %v319_v38 = vadd.f32 %v505_v33, %v503_v31 }
 0x19a   :  { %v509_v35 = vpop.eup %508 }
 0x19b   :  { %v714_v36 = vpop.eup %510  ;;  %v356_v37 = vadd.f32 %v509_v35, %v507_v34 }
 0x19c   :  { %v513_v39 = vpop.eup %512 }
 0x19d   :  { %v515_v40 = vpop.eup %514  ;;  %357 = vadd.xlane.f32.xlu1 %v356_v37  ;;  %320 = vadd.xlane.f32.xlu0 %v319_v38  ;;  %v322_v43 = vadd.f32 %v513_v39, %v714_v36 }
 0x19e   :  { %v517_v41 = vpop.eup %516 }
 0x19f   :  { %v387_v42 = vadd.f32 %v517_v41, %v515_v40 }
 0x1a1   :  { %v717_v44 = vpop.eup %518  ;;  %388 = vadd.xlane.f32.xlu0 %v387_v42  ;;  %323 = vadd.xlane.f32.xlu1 %v322_v43 }
 0x1a2   :  { %v521_v45 = vpop.eup %520 }
 0x1a3   :  { %v390_v46 = vadd.f32 %v521_v45, %v717_v44 }
 0x1a5   :  { %391 = vadd.xlane.f32.xlu1 %v390_v46 }
 0x222   :  { %v355_v47 = vpop.xlane.xlu0 %354 }
 0x223   :  { %522 = vrcp.f32 %v355_v47 }
 0x226   :  { %v321_v48 = vpop.xlane.xlu0 %320  ;;  %v358_v49 = vpop.xlane.xlu1 %357 }
 0x227   :  { %524 = vrcp.f32 %v321_v48 }
 0x228   :  { %526 = vrcp.f32 %v358_v49 }
 0x22a   :  { %v389_v50 = vpop.xlane.xlu0 %388  ;;  %v324_v51 = vpop.xlane.xlu1 %323 }
 0x22b   :  { %528 = vrcp.f32 %v389_v50 }
 0x22c   :  { %530 = vrcp.f32 %v324_v51 }
 0x22e   :  { %v392_v52 = vpop.xlane.xlu1 %391 }
 0x22f   :  { %532 = vrcp.f32 %v392_v52 }
 0x230   :  { %v523_v53 = vpop.eup %522 }
 0x231   :  { %v361_v54 = vmul.f32 %v523_v53, %v499_v29  ;;  %v362_v55 = vmul.f32 %v523_v53, %v501_v30 }
 0x233   :  { %365 = vst [vmem:[#allocation9] sm:$0xff] %v361_v54  ;;  %366 = vst [vmem:[#allocation9 + $0x8] sm:$0xff] %v362_v55 }
 0x234   :  { %v525_v56 = vpop.eup %524 }
 0x235   :  { %v527_v57 = vpop.eup %526  ;;  %v327_v58 = vmul.f32 %v525_v56, %v503_v31  ;;  %v328_v59 = vmul.f32 %v525_v56, %v505_v33 }
 0x236   :  { %v363_v60 = vmul.f32 %v527_v57, %v507_v34  ;;  %v364_v61 = vmul.f32 %v527_v57, %v509_v35 }
 0x237   :  { %331 = vst [vmem:[#allocation8] sm:$0xff] %v327_v58  ;;  %332 = vst [vmem:[#allocation8 + $0x8] sm:$0xff] %v328_v59 }
 0x238   :  { %v529_v62 = vpop.eup %528  ;;  %367 = vst [vmem:[#allocation9 + $0x10] sm:$0xff] %v363_v60  ;;  %368 = vst [vmem:[#allocation9 + $0x18] sm:$0xff] %v364_v61 }
 0x239   :  { %v531_v63 = vpop.eup %530  ;;  %v395_v0 = vmul.f32 %v529_v62, %v515_v40  ;;  %v396_v1 = vmul.f32 %v529_v62, %v517_v41 }
 0x23a   :  { %605 = shalt.err (!%p602_p5)
}
 0x23b   :  { %s673_s16 = smov 256   ;;  %s674_s17 = smov 16   ;;  %v329_v2 = vmul.f32 %v531_v63, %v714_v36  ;;  %v330_v3 = vmul.f32 %v531_v63, %v513_v39  ;;  %399 = vst [vmem:[#allocation11] sm:$0xff] %v395_v0  ;;  %400 = vst [vmem:[#allocation11 + $0x8] sm:$0xff] %v396_v1 }
 0x23c   :  { %426 = dma.vmem_to_hbm [thread:$0]  %s421_s2, 512, %s744_s4, [#allocation10], %s673_s16, %s673_s16, %s674_s17   ;;  %v533_v4 = vpop.eup %532 }
 0x23d   :  { %333 = vst [vmem:[#allocation8 + $0x10] sm:$0xff] %v329_v2  ;;  %334 = vst [vmem:[#allocation8 + $0x18] sm:$0xff] %v330_v3  ;;  %v397_v5 = vmul.f32 %v533_v4, %v717_v44  ;;  %v398_v6 = vmul.f32 %v533_v4, %v521_v45  ;;  %s614_s20 = scalar_lea.vmem %s409_s12, 512  ;;  %p619_p7 = scmp.lt.s32.totalorder %s409_s12, %s409_s12 }
 0x23e   :  { %p615_p6 = scmp.ne.s32.totalorder %s409_s12, %s614_s20  ;;  %p620_p8 = scmp.lt.s32.totalorder %s614_s20, %s614_s20 }
 0x240   :  { %p621_p9 = por %p620_p8, %p619_p7 }
 0x242   :  { %p622_p10 = pnand %p621_p9, %p615_p6 }
 0x244   :  { %625 = shalt.err (!%p622_p10)
}
 0x245   :  { %414 = dma.vmem_to_hbm [thread:$0]  %s409_s12, 512, %s743_s3, [#allocation4], %s673_s16, %s673_s16, %s674_s17   ;;  %401 = vst [vmem:[#allocation11 + $0x10] sm:$0xff] %v397_v5  ;;  %402 = vst [vmem:[#allocation11 + $0x18] sm:$0xff] %v398_v6 }
 0x246   :  { %s634_s22 = scalar_lea.vmem %s433_s14, 512  ;;  %p639_p12 = scmp.lt.s32.totalorder %s433_s14, %s433_s14 }
 0x247   :  { %p635_p11 = scmp.ne.s32.totalorder %s433_s14, %s634_s22  ;;  %p640_p13 = scmp.lt.s32.totalorder %s634_s22, %s634_s22 }
 0x249   :  { %p641_p0 = por %p640_p13, %p639_p12 }
 0x24b   :  { %p642_p1 = pnand %p641_p0, %p635_p11 }
 0x24d   :  { %645 = shalt.err (!%p642_p1)
}
 0x24e   :  { %438 = dma.vmem_to_hbm [thread:$0]  %s433_s14, 512, %s745_s5, [#allocation10], %s673_s16, %s673_s16, %s674_s17  }
 0x24f   :  { %658 = dma.done.wait [#allocation4], 512  }
 0x250   :  { %659 = vsyncadd [#allocation4], 4294966784 }
 0x251   :  { %660 = dma.done.wait [#allocation10], 1024  }
 0x252   :  { %661 = vsyncadd [#allocation10], 4294966272 }
 0x253   :  { %448 = vsyncpa [#allocation3], 1 }
 0x254   :  { %449 = vsyncpa [#allocation6], 1 }
 0x255   :  { %450 = vsyncpa [#allocation4], 1 }
 0x256   :  { %451 = vsyncpa [#allocation10], 1 }

</bundles_post_ra>
